<compile_context>
chip_gen: v5e
topology: v5e:2x2
jax: 0.10.0
libtpu: 0.0.40
codegen_flags: <defaults>
</compile_context>

<pallas_src>
import functools

import numpy as np
import jax
import jax.numpy as jnp
from jax import lax
from jax.experimental import pallas as pl
from jax.experimental.pallas import tpu as pltpu

WINDOW_SIZE = 3
STRIDE = 3
SIGMA = 1.5
C1 = 0.01 ** 2
C2 = 0.03 ** 2

LANES = 128
MAX_TILE_ROWS = 512      # 9*512*128*4B ~= 2.25 MiB per input per buffer

_ARBITRARY = getattr(pltpu, "ARBITRARY", "arbitrary")


def _round_up(x, m):
    return ((x + m - 1) // m) * m


def _cdiv(a, b):
    return -(-a // b)


def _gaussian_window_2d(window_size=WINDOW_SIZE, sigma=SIGMA):
    """Same normalized separable gaussian window as torch `create_window`."""
    xs = np.arange(window_size, dtype=np.float64)
    g = np.exp(-((xs - window_size // 2) ** 2) / (2.0 * sigma ** 2))
    g = g / g.sum()
    return np.outer(g, g).astype(np.float32)          # (k, k), sums to 1


def _core_split_config():
    """Return (num core splits, leading-axis grid semantics) for this chip."""
    parallel = getattr(pltpu, "PARALLEL", "parallel")
    core_parallel = getattr(pltpu, "CORE_PARALLEL", parallel)
    try:
        kind = jax.devices()[0].device_kind.lower()
    except Exception:
        return 1, _ARBITRARY
    if "7x" in kind or "v7" in kind:
        # 2 TensorCores/chip; only CORE_PARALLEL reliably core-shards an axis.
        return 2, core_parallel
    if "v4" in kind or "v5p" in kind:
        # Megacore chips: classic "parallel" splits the axis across both cores.
        return 2, parallel
    # v5e / v6e / unknown: single TensorCore -> no leading split.
    return 1, _ARBITRARY


def _patches_taps_major(x, ksize, stride, pad):
    """NCHW -> (k*k, B*C*OH*OW) taps-major patch matrix via pad+reshape (no gather).

    Valid because stride == ksize (window 3, stride 3) makes the windows
    non-overlapping on the padded image.  A single lax.pad both adds the conv
    zero border and trims unused trailing rows/cols (negative high padding).
    """
    assert stride == ksize, "reshape-based im2col requires stride == window_size"
    B, C, H, W = x.shape
    OH = (H + 2 * pad - ksize) // stride + 1
    OW = (W + 2 * pad - ksize) // stride + 1
    cfg = [(0, 0, 0), (0, 0, 0),
           (pad, ksize * OH - H - pad, 0),
           (pad, ksize * OW - W - pad, 0)]
    xp = lax.pad(x, jnp.array(0.0, dtype=x.dtype), cfg)   # (B,C,3OH,3OW)
    xr = xp.reshape(B, C, OH, ksize, OW, ksize)
    xr = jnp.transpose(xr, (3, 5, 0, 1, 2, 4))             # (kh, kw, B, C, OH, OW)
    return xr.reshape(ksize * ksize, B * C * OH * OW), (B, C, OH, OW)


def _ssim_kernel(p1_ref, p2_ref, out_ref, acc_ref, *, taps, n_valid, rows_per_core):
    """One (9, tile_rows, 128) tile of both images -> accumulate masked SSIM sum.

    p1_ref/p2_ref : (9, tr, 128) taps-major patch tiles
    out_ref       : (8, 128) per-core output block (partial mean broadcast)
    acc_ref       : (8, 128) f32 VMEM partial-sum accumulator (grid-resident)
    """
    c = pl.program_id(0)            # core-split index
    i = pl.program_id(1)            # pixel-tile index (reduction axis)
    n_steps = pl.num_programs(1)

    @pl.when(i == 0)
    def _init():
        acc_ref[...] = jnp.zeros_like(acc_ref)

    _, tr, lanes = p1_ref.shape

    # Unrolled 9-tap depthwise conv: weighted first/second moments on dense
    # (tr, 128) tiles; gaussian taps are Python-float immediates.
    x1 = p1_ref[0]
    x2 = p2_ref[0]
    t1 = taps[0] * x1
    t2 = taps[0] * x2
    mu1, mu2 = t1, t2
    e11, e22, e12 = t1 * x1, t2 * x2, t1 * x2
    for k in range(1, len(taps)):
        x1 = p1_ref[k]
        x2 = p2_ref[k]
        t1 = taps[k] * x1
        t2 = taps[k] * x2
        mu1 = mu1 + t1
        mu2 = mu2 + t2
        e11 = e11 + t1 * x1
        e22 = e22 + t2 * x2
        e12 = e12 + t1 * x2

    mu1_sq = mu1 * mu1
    mu2_sq = mu2 * mu2
    mu1_mu2 = mu1 * mu2
    sigma1_sq = e11 - mu1_sq
    sigma2_sq = e22 - mu2_sq
    sigma12 = e12 - mu1_mu2

    numer = (2.0 * mu1_mu2 + C1) * (2.0 * sigma12 + C2)
    denom = (mu1_sq + mu2_sq + C1) * (sigma1_sq + sigma2_sq + C2)
    # EUP approximate reciprocal + one Newton-Raphson refinement instead of a
    # multi-op VPU divide (rel. error ~1e-7, well within the 1e-5 tolerance).
    r = pl.reciprocal(denom, approx=True)
    r = r * (2.0 - denom * r)
    ssim_map = numer * r

    def _accumulate(m):
        # (tr,128) -> (tr//8, 8, 128) is a sublane-aligned vreg regrouping; the
        # axis-0 sum is plain vreg adds into the tiny (8,128) accumulator.
        acc_ref[...] = acc_ref[...] + m.reshape(tr // 8, 8, lanes).sum(axis=0)

    # Tail handling: zero-padded patches would evaluate to SSIM == 1 and bias
    # the mean.  Only tiles extending past the last fully-valid lane-row pay
    # for the mask; the comparison is row/lane based (no 32-bit index overflow).
    n_full_rows = n_valid // lanes          # static
    tail = n_valid % lanes                  # static
    row0 = c * rows_per_core + i * tr       # first global lane-row of this tile
    fully_valid = (row0 + tr) <= n_full_rows

    @pl.when(fully_valid)
    def _fast():
        _accumulate(ssim_map)

    @pl.when(jnp.logical_not(fully_valid))
    def _masked():
        gr = row0 + lax.broadcasted_iota(jnp.int32, (tr, lanes), 0)
        col = lax.broadcasted_iota(jnp.int32, (tr, lanes), 1)
        valid = (gr < n_full_rows) | ((gr == n_full_rows) & (col < tail))
        _accumulate(jnp.where(valid, ssim_map, 0.0))

    @pl.when(i == n_steps - 1)
    def _finalize():
        partial = jnp.sum(acc_ref[...]) * (1.0 / n_valid)
        out_ref[...] = jnp.full(out_ref.shape, partial, dtype=jnp.float32)


def ssim_pallas(img1, img2, window_size=WINDOW_SIZE, stride=STRIDE):
    """Equivalent of SSIM(window_size=3, size_average=True, stride=3)(img1, img2)."""
    img1 = img1.astype(jnp.float32)
    img2 = img2.astype(jnp.float32)
    pad = (window_size - 1) // 2
    p1, _ = _patches_taps_major(img1, window_size, stride, pad)
    p2, _ = _patches_taps_major(img2, window_size, stride, pad)
    k2, n = p1.shape
    taps = tuple(float(v) for v in _gaussian_window_2d(window_size).reshape(-1))

    def run(ncores, lead_sem):
        # Pixel axis -> (rows, 128) lanes; derive tile_rows from n so padding
        # is bounded by <8 rows per core (instead of up to a full max tile).
        n_rows = _cdiv(n, LANES)
        steps = _cdiv(n_rows, ncores * MAX_TILE_ROWS)
        tile_rows = _round_up(_cdiv(n_rows, ncores * steps), 8)
        n_rows_pad = ncores * steps * tile_rows
        n_pad = n_rows_pad * LANES

        def to_tiles(p):
            if n_pad != n:
                p = jnp.pad(p, ((0, 0), (0, n_pad - n)))
            return p.reshape(k2, n_rows_pad, LANES)

        p1t = to_tiles(p1)
        p2t = to_tiles(p2)

        kernel = functools.partial(_ssim_kernel, taps=taps, n_valid=n,
                                   rows_per_core=steps * tile_rows)
        in_spec = pl.BlockSpec((k2, tile_rows, LANES),
                               lambda c, i: (0, c * steps + i, 0))

        out = pl.pallas_call(
            kernel,
            out_shape=jax.ShapeDtypeStruct((ncores * 8, LANES), jnp.float32),
            grid_spec=pltpu.PrefetchScalarGridSpec(
                num_scalar_prefetch=0,
                grid=(ncores, steps),
                in_specs=[in_spec, in_spec],
                out_specs=pl.BlockSpec((8, LANES), lambda c, i: (c, 0)),
                scratch_shapes=[pltpu.VMEM((8, LANES), jnp.float32)],
            ),
            compiler_params=pltpu.CompilerParams(
                dimension_semantics=(lead_sem, _ARBITRARY),
                vmem_limit_bytes=32 * 1024 * 1024,
            ),
        )(p1t, p2t)

        # Each core split wrote its partial mean (already scaled by 1/N)
        # broadcast over its (8,128) block; combine the partials.
        return out[0::8, 0].sum()

    ncores, lead_sem = _core_split_config()
    if ncores > 1:
        try:
            return run(ncores, lead_sem)
        except Exception:
            # Multi-core (CORE_PARALLEL / megacore) path failed to lower on
            # this toolchain; fall back to the single-core configuration.
            return run(1, _ARBITRARY)
    return run(1, _ARBITRARY)


def ssim_reference(img1, img2, window_size=WINDOW_SIZE, stride=STRIDE):
    """Independent pure-JAX reference mirroring the PyTorch _ssim (grouped conv2d)."""
    img1 = img1.astype(jnp.float32)
    img2 = img2.astype(jnp.float32)
    _, C, _, _ = img1.shape
    pad = (window_size - 1) // 2
    w2d = _gaussian_window_2d(window_size)
    w = jnp.asarray(np.tile(w2d[None, None], (C, 1, 1, 1)))   # (C, 1, k, k)

    def conv(x):
        return lax.conv_general_dilated(
            x, w, window_strides=(stride, stride),
            padding=((pad, pad), (pad, pad)),
            dimension_numbers=("NCHW", "OIHW", "NCHW"),
            feature_group_count=C,
            precision=lax.Precision.HIGHEST)

    mu1 = conv(img1)
    mu2 = conv(img2)
    s1 = conv(img1 * img1) - mu1 * mu1
    s2 = conv(img2 * img2) - mu2 * mu2
    s12 = conv(img1 * img2) - mu1 * mu2
    m = ((2 * mu1 * mu2 + C1) * (2 * s12 + C2)) / (
        (mu1 * mu1 + mu2 * mu2 + C1) * (s1 + s2 + C2))
    return jnp.mean(m)


if __name__ == "__main__":
    key = jax.random.PRNGKey(0)
    k1, k2 = jax.random.split(key)
    B, C, H, W = 2, 4, 16, 16
    img1 = jax.random.uniform(k1, (B, C, H, W), dtype=jnp.float32)
    img2 = jax.random.uniform(k2, (B, C, H, W), dtype=jnp.float32)

    out = jax.block_until_ready(ssim_pallas(img1, img2))
    ref = jax.block_until_ready(ssim_reference(img1, img2))
    assert np.allclose(np.asarray(out), np.asarray(ref), rtol=1e-5, atol=1e-5), (out, ref)

    print("KERNEL_OK")
</pallas_src>

<mosaic_0001>
module attributes {stable_mosaic.version = 11 : i64} {
  func.func @_ssim_kernel(%arg0: i32, %arg1: i32, %arg2: memref<9x8x128xf32, #tpu.memory_space<vmem>>, %arg3: memref<9x8x128xf32, #tpu.memory_space<vmem>>, %arg4: memref<8x128xf32, #tpu.memory_space<vmem>>, %arg5: memref<8x128xf32, #tpu.memory_space<vmem>>) attributes {dimension_semantics = [#tpu.dimension_semantics<arbitrary>, #tpu.dimension_semantics<arbitrary>], iteration_bounds = array<i64: 1, 1>, scalar_prefetch = 0 : i64, scratch_operands = 1 : i64, tpu.core_type = #tpu.core_type<tc>, window_params = [{transform_indices = @transform_0, window_bounds = array<i64: 9, 8, 128>}, {transform_indices = @transform_1, window_bounds = array<i64: 9, 8, 128>}, {transform_indices = @transform_2, window_bounds = array<i64: 8, 128>}]} {
    %c0_i32 = arith.constant 0 : i32
    %0 = arith.cmpi eq, %arg1, %c0_i32 : i32
    %1 = arith.extui %0 : i1 to i32
    %c0_i32_0 = arith.constant 0 : i32
    %2 = arith.cmpi ne, %1, %c0_i32_0 : i32
    scf.if %2 {
      %cst_76 = arith.constant 0.000000e+00 : f32
      %183 = vector.broadcast %cst_76 : f32 to vector<8x128xf32>
      %c0_77 = arith.constant 0 : index
      %c0_78 = arith.constant 0 : index
      %184 = vector.load %arg5[%c0_77, %c0_78] : memref<8x128xf32, #tpu.memory_space<vmem>>, vector<8x128xf32>
      tpu.vector_store %arg5[%c0_77, %c0_78], %183 {strides = array<i32>} : memref<8x128xf32, #tpu.memory_space<vmem>>, vector<8x128xf32>,
    } else {
    }
    %c0 = arith.constant 0 : index
    %c0_1 = arith.constant 0 : index
    %c0_2 = arith.constant 0 : index
    %3 = vector.load %arg2[%c0, %c0_1, %c0_2] : memref<9x8x128xf32, #tpu.memory_space<vmem>>, vector<1x8x128xf32>
    %4 = vector.shape_cast %3 : vector<1x8x128xf32> to vector<8x128xf32>
    %c0_3 = arith.constant 0 : index
    %c0_4 = arith.constant 0 : index
    %c0_5 = arith.constant 0 : index
    %5 = vector.load %arg3[%c0_3, %c0_4, %c0_5] : memref<9x8x128xf32, #tpu.memory_space<vmem>>, vector<1x8x128xf32>
    %6 = vector.shape_cast %5 : vector<1x8x128xf32> to vector<8x128xf32>
    %cst = arith.constant 0.0947416574 : f32
    %7 = vector.broadcast %cst : f32 to vector<8x128xf32>
    %8 = arith.mulf %7, %4 : vector<8x128xf32>
    %cst_6 = arith.constant 0.0947416574 : f32
    %9 = vector.broadcast %cst_6 : f32 to vector<8x128xf32>
    %10 = arith.mulf %9, %6 : vector<8x128xf32>
    %11 = arith.mulf %8, %4 : vector<8x128xf32>
    %12 = arith.mulf %10, %6 : vector<8x128xf32>
    %13 = arith.mulf %8, %6 : vector<8x128xf32>
    %c1 = arith.constant 1 : index
    %c0_7 = arith.constant 0 : index
    %c0_8 = arith.constant 0 : index
    %14 = vector.load %arg2[%c1, %c0_7, %c0_8] : memref<9x8x128xf32, #tpu.memory_space<vmem>>, vector<1x8x128xf32>
    %15 = vector.shape_cast %14 : vector<1x8x128xf32> to vector<8x128xf32>
    %c1_9 = arith.constant 1 : index
    %c0_10 = arith.constant 0 : index
    %c0_11 = arith.constant 0 : index
    %16 = vector.load %arg3[%c1_9, %c0_10, %c0_11] : memref<9x8x128xf32, #tpu.memory_space<vmem>>, vector<1x8x128xf32>
    %17 = vector.shape_cast %16 : vector<1x8x128xf32> to vector<8x128xf32>
    %cst_12 = arith.constant 0.118318014 : f32
    %18 = vector.broadcast %cst_12 : f32 to vector<8x128xf32>
    %19 = arith.mulf %18, %15 : vector<8x128xf32>
    %cst_13 = arith.constant 0.118318014 : f32
    %20 = vector.broadcast %cst_13 : f32 to vector<8x128xf32>
    %21 = arith.mulf %20, %17 : vector<8x128xf32>
    %22 = arith.addf %8, %19 : vector<8x128xf32>
    %23 = arith.addf %10, %21 : vector<8x128xf32>
    %24 = arith.mulf %19, %15 : vector<8x128xf32>
    %25 = arith.addf %11, %24 : vector<8x128xf32>
    %26 = arith.mulf %21, %17 : vector<8x128xf32>
    %27 = arith.addf %12, %26 : vector<8x128xf32>
    %28 = arith.mulf %19, %17 : vector<8x128xf32>
    %29 = arith.addf %13, %28 : vector<8x128xf32>
    %c2 = arith.constant 2 : index
    %c0_14 = arith.constant 0 : index
    %c0_15 = arith.constant 0 : index
    %30 = vector.load %arg2[%c2, %c0_14, %c0_15] : memref<9x8x128xf32, #tpu.memory_space<vmem>>, vector<1x8x128xf32>
    %31 = vector.shape_cast %30 : vector<1x8x128xf32> to vector<8x128xf32>
    %c2_16 = arith.constant 2 : index
    %c0_17 = arith.constant 0 : index
    %c0_18 = arith.constant 0 : index
    %32 = vector.load %arg3[%c2_16, %c0_17, %c0_18] : memref<9x8x128xf32, #tpu.memory_space<vmem>>, vector<1x8x128xf32>
    %33 = vector.shape_cast %32 : vector<1x8x128xf32> to vector<8x128xf32>
    %cst_19 = arith.constant 0.0947416574 : f32
    %34 = vector.broadcast %cst_19 : f32 to vector<8x128xf32>
    %35 = arith.mulf %34, %31 : vector<8x128xf32>
    %cst_20 = arith.constant 0.0947416574 : f32
    %36 = vector.broadcast %cst_20 : f32 to vector<8x128xf32>
    %37 = arith.mulf %36, %33 : vector<8x128xf32>
    %38 = arith.addf %22, %35 : vector<8x128xf32>
    %39 = arith.addf %23, %37 : vector<8x128xf32>
    %40 = arith.mulf %35, %31 : vector<8x128xf32>
    %41 = arith.addf %25, %40 : vector<8x128xf32>
    %42 = arith.mulf %37, %33 : vector<8x128xf32>
    %43 = arith.addf %27, %42 : vector<8x128xf32>
    %44 = arith.mulf %35, %33 : vector<8x128xf32>
    %45 = arith.addf %29, %44 : vector<8x128xf32>
    %c3 = arith.constant 3 : index
    %c0_21 = arith.constant 0 : index
    %c0_22 = arith.constant 0 : index
    %46 = vector.load %arg2[%c3, %c0_21, %c0_22] : memref<9x8x128xf32, #tpu.memory_space<vmem>>, vector<1x8x128xf32>
    %47 = vector.shape_cast %46 : vector<1x8x128xf32> to vector<8x128xf32>
    %c3_23 = arith.constant 3 : index
    %c0_24 = arith.constant 0 : index
    %c0_25 = arith.constant 0 : index
    %48 = vector.load %arg3[%c3_23, %c0_24, %c0_25] : memref<9x8x128xf32, #tpu.memory_space<vmem>>, vector<1x8x128xf32>
    %49 = vector.shape_cast %48 : vector<1x8x128xf32> to vector<8x128xf32>
    %cst_26 = arith.constant 0.118318014 : f32
    %50 = vector.broadcast %cst_26 : f32 to vector<8x128xf32>
    %51 = arith.mulf %50, %47 : vector<8x128xf32>
    %cst_27 = arith.constant 0.118318014 : f32
    %52 = vector.broadcast %cst_27 : f32 to vector<8x128xf32>
    %53 = arith.mulf %52, %49 : vector<8x128xf32>
    %54 = arith.addf %38, %51 : vector<8x128xf32>
    %55 = arith.addf %39, %53 : vector<8x128xf32>
    %56 = arith.mulf %51, %47 : vector<8x128xf32>
    %57 = arith.addf %41, %56 : vector<8x128xf32>
    %58 = arith.mulf %53, %49 : vector<8x128xf32>
    %59 = arith.addf %43, %58 : vector<8x128xf32>
    %60 = arith.mulf %51, %49 : vector<8x128xf32>
    %61 = arith.addf %45, %60 : vector<8x128xf32>
    %c4 = arith.constant 4 : index
    %c0_28 = arith.constant 0 : index
    %c0_29 = arith.constant 0 : index
    %62 = vector.load %arg2[%c4, %c0_28, %c0_29] : memref<9x8x128xf32, #tpu.memory_space<vmem>>, vector<1x8x128xf32>
    %63 = vector.shape_cast %62 : vector<1x8x128xf32> to vector<8x128xf32>
    %c4_30 = arith.constant 4 : index
    %c0_31 = arith.constant 0 : index
    %c0_32 = arith.constant 0 : index
    %64 = vector.load %arg3[%c4_30, %c0_31, %c0_32] : memref<9x8x128xf32, #tpu.memory_space<vmem>>, vector<1x8x128xf32>
    %65 = vector.shape_cast %64 : vector<1x8x128xf32> to vector<8x128xf32>
    %cst_33 = arith.constant 0.147761315 : f32
    %66 = vector.broadcast %cst_33 : f32 to vector<8x128xf32>
    %67 = arith.mulf %66, %63 : vector<8x128xf32>
    %cst_34 = arith.constant 0.147761315 : f32
    %68 = vector.broadcast %cst_34 : f32 to vector<8x128xf32>
    %69 = arith.mulf %68, %65 : vector<8x128xf32>
    %70 = arith.addf %54, %67 : vector<8x128xf32>
    %71 = arith.addf %55, %69 : vector<8x128xf32>
    %72 = arith.mulf %67, %63 : vector<8x128xf32>
    %73 = arith.addf %57, %72 : vector<8x128xf32>
    %74 = arith.mulf %69, %65 : vector<8x128xf32>
    %75 = arith.addf %59, %74 : vector<8x128xf32>
    %76 = arith.mulf %67, %65 : vector<8x128xf32>
    %77 = arith.addf %61, %76 : vector<8x128xf32>
    %c5 = arith.constant 5 : index
    %c0_35 = arith.constant 0 : index
    %c0_36 = arith.constant 0 : index
    %78 = vector.load %arg2[%c5, %c0_35, %c0_36] : memref<9x8x128xf32, #tpu.memory_space<vmem>>, vector<1x8x128xf32>
    %79 = vector.shape_cast %78 : vector<1x8x128xf32> to vector<8x128xf32>
    %c5_37 = arith.constant 5 : index
    %c0_38 = arith.constant 0 : index
    %c0_39 = arith.constant 0 : index
    %80 = vector.load %arg3[%c5_37, %c0_38, %c0_39] : memref<9x8x128xf32, #tpu.memory_space<vmem>>, vector<1x8x128xf32>
    %81 = vector.shape_cast %80 : vector<1x8x128xf32> to vector<8x128xf32>
    %cst_40 = arith.constant 0.118318014 : f32
    %82 = vector.broadcast %cst_40 : f32 to vector<8x128xf32>
    %83 = arith.mulf %82, %79 : vector<8x128xf32>
    %cst_41 = arith.constant 0.118318014 : f32
    %84 = vector.broadcast %cst_41 : f32 to vector<8x128xf32>
    %85 = arith.mulf %84, %81 : vector<8x128xf32>
    %86 = arith.addf %70, %83 : vector<8x128xf32>
    %87 = arith.addf %71, %85 : vector<8x128xf32>
    %88 = arith.mulf %83, %79 : vector<8x128xf32>
    %89 = arith.addf %73, %88 : vector<8x128xf32>
    %90 = arith.mulf %85, %81 : vector<8x128xf32>
    %91 = arith.addf %75, %90 : vector<8x128xf32>
    %92 = arith.mulf %83, %81 : vector<8x128xf32>
    %93 = arith.addf %77, %92 : vector<8x128xf32>
    %c6 = arith.constant 6 : index
    %c0_42 = arith.constant 0 : index
    %c0_43 = arith.constant 0 : index
    %94 = vector.load %arg2[%c6, %c0_42, %c0_43] : memref<9x8x128xf32, #tpu.memory_space<vmem>>, vector<1x8x128xf32>
    %95 = vector.shape_cast %94 : vector<1x8x128xf32> to vector<8x128xf32>
    %c6_44 = arith.constant 6 : index
    %c0_45 = arith.constant 0 : index
    %c0_46 = arith.constant 0 : index
    %96 = vector.load %arg3[%c6_44, %c0_45, %c0_46] : memref<9x8x128xf32, #tpu.memory_space<vmem>>, vector<1x8x128xf32>
    %97 = vector.shape_cast %96 : vector<1x8x128xf32> to vector<8x128xf32>
    %cst_47 = arith.constant 0.0947416574 : f32
    %98 = vector.broadcast %cst_47 : f32 to vector<8x128xf32>
    %99 = arith.mulf %98, %95 : vector<8x128xf32>
    %cst_48 = arith.constant 0.0947416574 : f32
    %100 = vector.broadcast %cst_48 : f32 to vector<8x128xf32>
    %101 = arith.mulf %100, %97 : vector<8x128xf32>
    %102 = arith.addf %86, %99 : vector<8x128xf32>
    %103 = arith.addf %87, %101 : vector<8x128xf32>
    %104 = arith.mulf %99, %95 : vector<8x128xf32>
    %105 = arith.addf %89, %104 : vector<8x128xf32>
    %106 = arith.mulf %101, %97 : vector<8x128xf32>
    %107 = arith.addf %91, %106 : vector<8x128xf32>
    %108 = arith.mulf %99, %97 : vector<8x128xf32>
    %109 = arith.addf %93, %108 : vector<8x128xf32>
    %c7 = arith.constant 7 : index
    %c0_49 = arith.constant 0 : index
    %c0_50 = arith.constant 0 : index
    %110 = vector.load %arg2[%c7, %c0_49, %c0_50] : memref<9x8x128xf32, #tpu.memory_space<vmem>>, vector<1x8x128xf32>
    %111 = vector.shape_cast %110 : vector<1x8x128xf32> to vector<8x128xf32>
    %c7_51 = arith.constant 7 : index
    %c0_52 = arith.constant 0 : index
    %c0_53 = arith.constant 0 : index
    %112 = vector.load %arg3[%c7_51, %c0_52, %c0_53] : memref<9x8x128xf32, #tpu.memory_space<vmem>>, vector<1x8x128xf32>
    %113 = vector.shape_cast %112 : vector<1x8x128xf32> to vector<8x128xf32>
    %cst_54 = arith.constant 0.118318014 : f32
    %114 = vector.broadcast %cst_54 : f32 to vector<8x128xf32>
    %115 = arith.mulf %114, %111 : vector<8x128xf32>
    %cst_55 = arith.constant 0.118318014 : f32
    %116 = vector.broadcast %cst_55 : f32 to vector<8x128xf32>
    %117 = arith.mulf %116, %113 : vector<8x128xf32>
    %118 = arith.addf %102, %115 : vector<8x128xf32>
    %119 = arith.addf %103, %117 : vector<8x128xf32>
    %120 = arith.mulf %115, %111 : vector<8x128xf32>
    %121 = arith.addf %105, %120 : vector<8x128xf32>
    %122 = arith.mulf %117, %113 : vector<8x128xf32>
    %123 = arith.addf %107, %122 : vector<8x128xf32>
    %124 = arith.mulf %115, %113 : vector<8x128xf32>
    %125 = arith.addf %109, %124 : vector<8x128xf32>
    %c8 = arith.constant 8 : index
    %c0_56 = arith.constant 0 : index
    %c0_57 = arith.constant 0 : index
    %126 = vector.load %arg2[%c8, %c0_56, %c0_57] : memref<9x8x128xf32, #tpu.memory_space<vmem>>, vector<1x8x128xf32>
    %127 = vector.shape_cast %126 : vector<1x8x128xf32> to vector<8x128xf32>
    %c8_58 = arith.constant 8 : index
    %c0_59 = arith.constant 0 : index
    %c0_60 = arith.constant 0 : index
    %128 = vector.load %arg3[%c8_58, %c0_59, %c0_60] : memref<9x8x128xf32, #tpu.memory_space<vmem>>, vector<1x8x128xf32>
    %129 = vector.shape_cast %128 : vector<1x8x128xf32> to vector<8x128xf32>
    %cst_61 = arith.constant 0.0947416574 : f32
    %130 = vector.broadcast %cst_61 : f32 to vector<8x128xf32>
    %131 = arith.mulf %130, %127 : vector<8x128xf32>
    %cst_62 = arith.constant 0.0947416574 : f32
    %132 = vector.broadcast %cst_62 : f32 to vector<8x128xf32>
    %133 = arith.mulf %132, %129 : vector<8x128xf32>
    %134 = arith.addf %118, %131 : vector<8x128xf32>
    %135 = arith.addf %119, %133 : vector<8x128xf32>
    %136 = arith.mulf %131, %127 : vector<8x128xf32>
    %137 = arith.addf %121, %136 : vector<8x128xf32>
    %138 = arith.mulf %133, %129 : vector<8x128xf32>
    %139 = arith.addf %123, %138 : vector<8x128xf32>
    %140 = arith.mulf %131, %129 : vector<8x128xf32>
    %141 = arith.addf %125, %140 : vector<8x128xf32>
    %142 = arith.mulf %134, %134 : vector<8x128xf32>
    %143 = arith.mulf %135, %135 : vector<8x128xf32>
    %144 = arith.mulf %134, %135 : vector<8x128xf32>
    %145 = arith.subf %137, %142 : vector<8x128xf32>
    %146 = arith.subf %139, %143 : vector<8x128xf32>
    %147 = arith.subf %141, %144 : vector<8x128xf32>
    %cst_63 = arith.constant 2.000000e+00 : f32
    %148 = vector.broadcast %cst_63 : f32 to vector<8x128xf32>
    %149 = arith.mulf %148, %144 : vector<8x128xf32>
    %cst_64 = arith.constant 9.99999974E-5 : f32
    %150 = vector.broadcast %cst_64 : f32 to vector<8x128xf32>
    %151 = arith.addf %149, %150 : vector<8x128xf32>
    %cst_65 = arith.constant 2.000000e+00 : f32
    %152 = vector.broadcast %cst_65 : f32 to vector<8x128xf32>
    %153 = arith.mulf %152, %147 : vector<8x128xf32>
    %cst_66 = arith.constant 8.99999984E-4 : f32
    %154 = vector.broadcast %cst_66 : f32 to vector<8x128xf32>
    %155 = arith.addf %153, %154 : vector<8x128xf32>
    %156 = arith.mulf %151, %155 : vector<8x128xf32>
    %157 = arith.addf %142, %143 : vector<8x128xf32>
    %cst_67 = arith.constant 9.99999974E-5 : f32
    %158 = vector.broadcast %cst_67 : f32 to vector<8x128xf32>
    %159 = arith.addf %157, %158 : vector<8x128xf32>
    %160 = arith.addf %145, %146 : vector<8x128xf32>
    %cst_68 = arith.constant 8.99999984E-4 : f32
    %161 = vector.broadcast %cst_68 : f32 to vector<8x128xf32>
    %162 = arith.addf %160, %161 : vector<8x128xf32>
    %163 = arith.mulf %159, %162 : vector<8x128xf32>
    %164 = tpu.reciprocal %163 {approx = true} : vector<8x128xf32> -> vector<8x128xf32>
    %165 = arith.mulf %163, %164 : vector<8x128xf32>
    %cst_69 = arith.constant 2.000000e+00 : f32
    %166 = vector.broadcast %cst_69 : f32 to vector<8x128xf32>
    %167 = arith.subf %166, %165 : vector<8x128xf32>
    %168 = arith.mulf %164, %167 : vector<8x128xf32>
    %169 = arith.mulf %156, %168 : vector<8x128xf32>
    %c8_i32 = arith.constant 8 : i32
    %170 = arith.muli %arg0, %c8_i32 : i32
    %c8_i32_70 = arith.constant 8 : i32
    %171 = arith.muli %arg1, %c8_i32_70 : i32
    %172 = arith.addi %170, %171 : i32
    %c8_i32_71 = arith.constant 8 : i32
    %173 = arith.addi %172, %c8_i32_71 : i32
    %c2_i32 = arith.constant 2 : i32
    %174 = arith.cmpi sle, %173, %c2_i32 : i32
    %175 = arith.extui %174 : i1 to i32
    %c0_i32_72 = arith.constant 0 : i32
    %176 = arith.cmpi ne, %175, %c0_i32_72 : i32
    scf.if %176 {
      %c0_76 = arith.constant 0 : index
      %c0_77 = arith.constant 0 : index
      %183 = vector.load %arg5[%c0_76, %c0_77] : memref<8x128xf32, #tpu.memory_space<vmem>>, vector<8x128xf32>
      %184 = vector.shape_cast %169 : vector<8x128xf32> to vector<1x8x128xf32>
      %cst_78 = arith.constant dense<0.000000e+00> : vector<8x128xf32>
      %185 = vector.multi_reduction <add>, %184, %cst_78 [0] : vector<1x8x128xf32> to vector<8x128xf32>
      %186 = arith.addf %183, %185 : vector<8x128xf32>
      %c0_79 = arith.constant 0 : index
      %c0_80 = arith.constant 0 : index
      %187 = vector.load %arg5[%c0_79, %c0_80] : memref<8x128xf32, #tpu.memory_space<vmem>>, vector<8x128xf32>
      tpu.vector_store %arg5[%c0_79, %c0_80], %186 {strides = array<i32>} : memref<8x128xf32, #tpu.memory_space<vmem>>, vector<8x128xf32>,
    } else {
    }
    %true = arith.constant true
    %177 = arith.xori %174, %true : i1
    %178 = arith.extui %177 : i1 to i32
    %c0_i32_73 = arith.constant 0 : i32
    %179 = arith.cmpi ne, %178, %c0_i32_73 : i32
    scf.if %179 {
      %183 = tpu.iota {dimensions = array<i32: 0>} : vector<8x128xi32>
      %184 = vector.broadcast %172 : i32 to vector<8x128xi32>
      %185 = arith.addi %184, %183 : vector<8x128xi32>
      %186 = tpu.iota {dimensions = array<i32: 1>} : vector<8x128xi32>
      %c2_i32_76 = arith.constant 2 : i32
      %187 = vector.broadcast %c2_i32_76 : i32 to vector<8x128xi32>
      %188 = arith.cmpi slt, %185, %187 : vector<8x128xi32>
      %c2_i32_77 = arith.constant 2 : i32
      %189 = vector.broadcast %c2_i32_77 : i32 to vector<8x128xi32>
      %190 = arith.cmpi eq, %185, %189 : vector<8x128xi32>
      %c32_i32 = arith.constant 32 : i32
      %191 = vector.broadcast %c32_i32 : i32 to vector<8x128xi32>
      %192 = arith.cmpi slt, %186, %191 : vector<8x128xi32>
      %193 = arith.andi %190, %192 : vector<8x128xi1>
      %194 = arith.ori %188, %193 : vector<8x128xi1>
      %cst_78 = arith.constant 0.000000e+00 : f32
      %195 = vector.broadcast %cst_78 : f32 to vector<8x128xf32>
      %196 = arith.select %194, %169, %195 : vector<8x128xi1>, vector<8x128xf32>
      %c0_79 = arith.constant 0 : index
      %c0_80 = arith.constant 0 : index
      %197 = vector.load %arg5[%c0_79, %c0_80] : memref<8x128xf32, #tpu.memory_space<vmem>>, vector<8x128xf32>
      %198 = vector.shape_cast %196 : vector<8x128xf32> to vector<1x8x128xf32>
      %cst_81 = arith.constant dense<0.000000e+00> : vector<8x128xf32>
      %199 = vector.multi_reduction <add>, %198, %cst_81 [0] : vector<1x8x128xf32> to vector<8x128xf32>
      %200 = arith.addf %197, %199 : vector<8x128xf32>
      %c0_82 = arith.constant 0 : index
      %c0_83 = arith.constant 0 : index
      %201 = vector.load %arg5[%c0_82, %c0_83] : memref<8x128xf32, #tpu.memory_space<vmem>>, vector<8x128xf32>
      tpu.vector_store %arg5[%c0_82, %c0_83], %200 {strides = array<i32>} : memref<8x128xf32, #tpu.memory_space<vmem>>, vector<8x128xf32>,
    } else {
    }
    %c0_i32_74 = arith.constant 0 : i32
    %180 = arith.cmpi eq, %arg1, %c0_i32_74 : i32
    %181 = arith.extui %180 : i1 to i32
    %c0_i32_75 = arith.constant 0 : i32
    %182 = arith.cmpi ne, %181, %c0_i32_75 : i32
    scf.if %182 {
      %c0_76 = arith.constant 0 : index
      %c0_77 = arith.constant 0 : index
      %183 = vector.load %arg5[%c0_76, %c0_77] : memref<8x128xf32, #tpu.memory_space<vmem>>, vector<8x128xf32>
      %184 = vector.shape_cast %183 : vector<8x128xf32> to vector<1x8x128xf32>
      %cst_78 = arith.constant dense<0.000000e+00> : vector<1xf32>
      %185 = vector.multi_reduction <add>, %184, %cst_78 [1, 2] : vector<1x8x128xf32> to vector<1xf32>
      %186 = vector.shape_cast %185 : vector<1xf32> to vector<1x1x1xf32>
      %187 = vector.extract %186[0, 0, 0] : f32 from vector<1x1x1xf32>
      %cst_79 = arith.constant 0.00347222225 : f32
      %188 = arith.mulf %187, %cst_79 : f32
      %189 = vector.broadcast %188 : f32 to vector<8x128xf32>
      %c0_80 = arith.constant 0 : index
      %c0_81 = arith.constant 0 : index
      %190 = vector.load %arg4[%c0_80, %c0_81] : memref<8x128xf32, #tpu.memory_space<vmem>>, vector<8x128xf32>
      tpu.vector_store %arg4[%c0_80, %c0_81], %189 {strides = array<i32>} : memref<8x128xf32, #tpu.memory_space<vmem>>, vector<8x128xf32>,
    } else {
    }
    return
  }
  func.func @transform_0(%arg0: i32, %arg1: i32) -> (i32, i32, i32) {
    %c1_i32 = arith.constant 1 : i32
    %0 = arith.muli %arg0, %c1_i32 : i32
    %1 = arith.addi %0, %arg1 : i32
    %c0_i32 = arith.constant 0 : i32
    %c0_i32_0 = arith.constant 0 : i32
    %c0_i32_1 = arith.constant 0 : i32
    return %c0_i32, %1, %c0_i32_0 : i32, i32, i32
  }
  func.func @transform_1(%arg0: i32, %arg1: i32) -> (i32, i32, i32) {
    %c1_i32 = arith.constant 1 : i32
    %0 = arith.muli %arg0, %c1_i32 : i32
    %1 = arith.addi %0, %arg1 : i32
    %c0_i32 = arith.constant 0 : i32
    %c0_i32_0 = arith.constant 0 : i32
    %c0_i32_1 = arith.constant 0 : i32
    return %c0_i32, %1, %c0_i32_0 : i32, i32, i32
  }
  func.func @transform_2(%arg0: i32, %arg1: i32) -> (i32, i32) {
    %c0_i32 = arith.constant 0 : i32
    %c0_i32_0 = arith.constant 0 : i32
    return %arg0, %c0_i32 : i32, i32
  }
}

</mosaic_0001>

<bundles_post_ra>
// kernel: tpu_custom_call.1
= control target key start
LH: loop header
LB: loop body
LE: loop exit
PB: predicated region body
PF: predicated region fallthrough
CT: control target
= control target key end

     0   :  { %7 = vsyncpa [#allocation4], 0  ;;  %s379_s0 = inlined_call_operand.hbm [shape: f32[9,8,128], index: 0, kind: input, shape index: {}]   ;;  %s380_s1 = inlined_call_operand.hbm [shape: f32[9,8,128], index: 1, kind: input, shape index: {}]   ;;  %s381_s2 = inlined_call_operand.hbm [shape: f32[8,128], index: 2, kind: output, shape index: {}]  }
   0x1   :  { %8 = vsyncpa [#allocation7], 0 }
   0x2   :  { %9 = vsyncpa [#allocation5], 0  ;;  %s17_s11 = sshll.u32 %s379_s0, 4  ;;  %s350_s12 = smov [#allocation3]   ;;  %s18_s11 = int_to_ptr.hbm [resolvable:$true] %s17_s11 }
   0x3   :  { %s19_s13 = sshll.u32 %s350_s12, 4  ;;  %s33_s16 = sshll.u32 %s380_s1, 4  ;;  %s20_s13 = int_to_ptr.vmem [resolvable:$true] %s19_s13  ;;  %s34_s16 = int_to_ptr.hbm [resolvable:$true] %s33_s16 }
   0x4   :  { %s351_s17 = smov 128   ;;  %s352_s18 = smov 8  }
   0x5   :  { %25 = dma.hbm_to_vmem [thread:$0]  %s18_s11, 1152, %s20_s13, [#allocation4], %s351_s17, %s351_s17, %s352_s18  }
   0x6   :  { %s353_s19 = smov [#allocation6]  }
   0x7   :  { %s35_s20 = sshll.u32 %s353_s19, 4  ;;  %s36_s20 = int_to_ptr.vmem [resolvable:$true] %s35_s20 }
   0x8   :  { %41 = dma.hbm_to_vmem [thread:$0]  %s34_s16, 1152, %s36_s20, [#allocation7], %s351_s17, %s351_s17, %s352_s18  }
   0x9   :  { %344 = dma.done.wait [#allocation4], 1152  }
   0xa   :  { %345 = vsyncadd [#allocation4], 4294966144 }
   0xb   :  { %346 = dma.done.wait [#allocation7], 1152  }
   0xc   :  { %347 = vsyncadd [#allocation7], 4294966144  ;;  %v57_v0 = vld [vmem:[#allocation3] sm:$0xff]  ;;  %v58_v1 = vld [vmem:[#allocation6] sm:$0xff]  ;;  %s354_s0 = smov [#allocation8]   ;;  %s252_s23 = sshll.u32 %s381_s2, 4  ;;  %s253_s23 = int_to_ptr.hbm [resolvable:$true] %s252_s23 }
   0xd   :  { %v65_v2 = vld [vmem:[#allocation3 + $0x8] sm:$0xff]  ;;  %v59_v3 = vmul.f32 0.09474166, %v57_v0  ;;  %v60_v4 = vmul.f32 0.09474166, %v58_v1  ;;  %v67_v5 = vld [vmem:[#allocation6 + $0x8] sm:$0xff] }
   0xe   :  { %v79_v6 = vld [vmem:[#allocation3 + $0x10] sm:$0xff]  ;;  %v68_v7 = vmul.f32 0.118318014, %v65_v2  ;;  %v69_v8 = vmul.f32 0.118318014, %v67_v5  ;;  %v81_v9 = vld [vmem:[#allocation6 + $0x10] sm:$0xff] }
   0xf   :  { %v61_v10 = vmul.f32 %v59_v3, %v57_v0  ;;  %v62_v11 = vmul.f32 %v60_v4, %v58_v1  ;;  %v63_v12 = vmul.f32 %v59_v3, %v58_v1  ;;  %v82_v13 = vmul.f32 0.09474166, %v79_v6  ;;  %v93_v14 = vld [vmem:[#allocation3 + $0x18] sm:$0xff]  ;;  %v95_v19 = vld [vmem:[#allocation6 + $0x18] sm:$0xff]  ;;  %v109_v33 = vld [vmem:[#allocation6 + $0x20] sm:$0xff]  ;;  %s250_s1 = sshll.u32 %s354_s0, 4  ;;  %s251_s1 = int_to_ptr.vmem [resolvable:$true] %s250_s1 }
  0x10   :  { %v70_v15 = vadd.f32 %v68_v7, %v59_v3  ;;  %v71_v16 = vadd.f32 %v69_v8, %v60_v4  ;;  %v72_v17 = vmul.f32 %v68_v7, %v65_v2  ;;  %v74_v18 = vmul.f32 %v69_v8, %v67_v5  ;;  %v107_v32 = vld [vmem:[#allocation3 + $0x20] sm:$0xff]  ;;  %v121_v34 = vld [vmem:[#allocation3 + $0x28] sm:$0xff]  ;;  %v123_v39 = vld [vmem:[#allocation6 + $0x28] sm:$0xff] }
  0x11   :  { %v76_v20 = vmul.f32 %v68_v7, %v67_v5  ;;  %v83_v21 = vmul.f32 0.09474166, %v81_v9  ;;  %v86_v22 = vmul.f32 %v82_v13, %v79_v6  ;;  %v90_v23 = vmul.f32 %v82_v13, %v81_v9  ;;  %v135_v40 = vld [vmem:[#allocation3 + $0x30] sm:$0xff]  ;;  %v137_v57 = vld [vmem:[#allocation6 + $0x30] sm:$0xff]  ;;  %v151_v3 = vld [vmem:[#allocation6 + $0x38] sm:$0xff] }
  0x12   :  { %v73_v24 = vadd.f32 %v72_v17, %v61_v10  ;;  %v75_v25 = vadd.f32 %v74_v18, %v62_v11  ;;  %v84_v26 = vadd.f32 %v82_v13, %v70_v15  ;;  %v96_v27 = vmul.f32 0.118318014, %v93_v14  ;;  %v149_v62 = vld [vmem:[#allocation3 + $0x38] sm:$0xff]  ;;  %v165_v17 = vld [vmem:[#allocation6 + $0x40] sm:$0xff] }
  0x13   :  { %v77_v28 = vadd.f32 %v76_v20, %v63_v12  ;;  %v85_v29 = vadd.f32 %v83_v21, %v71_v16  ;;  %v88_v30 = vmul.f32 %v83_v21, %v81_v9  ;;  %v97_v31 = vmul.f32 0.118318014, %v95_v19  ;;  %v163_v16 = vld [vmem:[#allocation3 + $0x40] sm:$0xff] }
  0x14   :  { %v87_v35 = vadd.f32 %v86_v22, %v73_v24  ;;  %v98_v36 = vadd.f32 %v96_v27, %v84_v26  ;;  %v100_v37 = vmul.f32 %v96_v27, %v93_v14  ;;  %v104_v38 = vmul.f32 %v96_v27, %v95_v19 }
  0x15   :  { %v89_v41 = vadd.f32 %v88_v30, %v75_v25  ;;  %v91_v42 = vadd.f32 %v90_v23, %v77_v28  ;;  %v99_v43 = vadd.f32 %v97_v31, %v85_v29  ;;  %v102_v44 = vmul.f32 %v97_v31, %v95_v19 }
  0x16   :  { %v101_v45 = vadd.f32 %v100_v37, %v87_v35  ;;  %v110_v46 = vmul.f32 0.14776132, %v107_v32  ;;  %v111_v47 = vmul.f32 0.14776132, %v109_v33  ;;  %v124_v48 = vmul.f32 0.118318014, %v121_v34 }
  0x17   :  { %v103_v49 = vadd.f32 %v102_v44, %v89_v41  ;;  %v105_v50 = vadd.f32 %v104_v38, %v91_v42  ;;  %v125_v51 = vmul.f32 0.118318014, %v123_v39  ;;  %v138_v52 = vmul.f32 0.09474166, %v135_v40 }
  0x18   :  { %v112_v53 = vadd.f32 %v110_v46, %v98_v36  ;;  %v113_v54 = vadd.f32 %v111_v47, %v99_v43  ;;  %v114_v55 = vmul.f32 %v110_v46, %v107_v32  ;;  %v116_v56 = vmul.f32 %v111_v47, %v109_v33 }
  0x19   :  { %v118_v58 = vmul.f32 %v110_v46, %v109_v33  ;;  %v128_v59 = vmul.f32 %v124_v48, %v121_v34  ;;  %v130_v60 = vmul.f32 %v125_v51, %v123_v39  ;;  %v132_v61 = vmul.f32 %v124_v48, %v123_v39 }
  0x1a   :  { %v115_v63 = vadd.f32 %v114_v55, %v101_v45  ;;  %v117_v0 = vadd.f32 %v116_v56, %v103_v49  ;;  %v126_v1 = vadd.f32 %v124_v48, %v112_v53  ;;  %v127_v2 = vadd.f32 %v125_v51, %v113_v54 }
  0x1b   :  { %v119_v4 = vadd.f32 %v118_v58, %v105_v50  ;;  %v139_v5 = vmul.f32 0.09474166, %v137_v57  ;;  %v142_v6 = vmul.f32 %v138_v52, %v135_v40  ;;  %v146_v7 = vmul.f32 %v138_v52, %v137_v57 }
  0x1c   :  { %v129_v8 = vadd.f32 %v128_v59, %v115_v63  ;;  %v131_v9 = vadd.f32 %v130_v60, %v117_v0  ;;  %v140_v10 = vadd.f32 %v138_v52, %v126_v1  ;;  %v152_v11 = vmul.f32 0.118318014, %v149_v62 }
  0x1d   :  { %v133_v12 = vadd.f32 %v132_v61, %v119_v4  ;;  %v141_v13 = vadd.f32 %v139_v5, %v127_v2  ;;  %v144_v14 = vmul.f32 %v139_v5, %v137_v57  ;;  %v153_v15 = vmul.f32 0.118318014, %v151_v3 }
  0x1e   :  { %v143_v18 = vadd.f32 %v142_v6, %v129_v8  ;;  %v154_v19 = vadd.f32 %v152_v11, %v140_v10  ;;  %v156_v20 = vmul.f32 %v152_v11, %v149_v62  ;;  %v160_v21 = vmul.f32 %v152_v11, %v151_v3 }
  0x1f   :  { %v145_v22 = vadd.f32 %v144_v14, %v131_v9  ;;  %v147_v23 = vadd.f32 %v146_v7, %v133_v12  ;;  %v155_v24 = vadd.f32 %v153_v15, %v141_v13  ;;  %v158_v25 = vmul.f32 %v153_v15, %v151_v3 }
  0x20   :  { %v157_v26 = vadd.f32 %v156_v20, %v143_v18  ;;  %v166_v27 = vmul.f32 0.09474166, %v163_v16  ;;  %v167_v28 = vmul.f32 0.09474166, %v165_v17  ;;  %v213_v50 = vlaneseq }
  0x21   :  { %v159_v29 = vadd.f32 %v158_v25, %v145_v22  ;;  %v161_v34 = vadd.f32 %v160_v21, %v147_v23 }
  0x22   :  { %v168_v30 = vadd.f32 %v166_v27, %v154_v19  ;;  %v169_v31 = vadd.f32 %v167_v28, %v155_v24  ;;  %v170_v32 = vmul.f32 %v166_v27, %v163_v16  ;;  %v172_v33 = vmul.f32 %v167_v28, %v165_v17 }
  0x23   :  { %v174_v35 = vmul.f32 %v166_v27, %v165_v17  ;;  %v214_v53 = vshrl.u32 %v213_v50, 7  ;;  %v218_v54 = vand.u32 127, %v213_v50 }
  0x24   :  { %v171_v36 = vadd.f32 %v170_v32, %v157_v26  ;;  %v173_v37 = vadd.f32 %v172_v33, %v159_v29  ;;  %v176_v38 = vmul.f32 %v168_v30, %v168_v30  ;;  %v177_v39 = vmul.f32 %v169_v31, %v169_v31 }
  0x25   :  { %v175_v43 = vadd.f32 %v174_v35, %v161_v34  ;;  %v178_v44 = vmul.f32 %v169_v31, %v168_v30  ;;  %vm220_vm0 = vcmp.eq.s32.totalorder %v214_v53, 2  ;;  %vm221_vm1 = vcmp.lt.s32.totalorder %v218_v54, 32 }
  0x26   :  { %v179_v40 = vsub.f32 %v171_v36, %v176_v38  ;;  %v180_v41 = vsub.f32 %v173_v37, %v177_v39  ;;  %v187_v42 = vadd.f32 %v177_v39, %v176_v38  ;;  %vm219_vm2 = vcmp.lt.s32.totalorder %v214_v53, 2  ;;  %vm222_vm3 = vmand %vm220_vm0, %vm221_vm1 }
  0x27   :  { %v181_v48 = vsub.f32 %v175_v43, %v178_v44  ;;  %v182_v51 = vmul.f32 2.0, %v178_v44  ;;  %vm223_vm4 = vmor %vm219_vm2, %vm222_vm3 }
  0x28   :  { %v188_v45 = vadd.f32 0.0001, %v187_v42  ;;  %v189_v46 = vadd.f32 %v180_v41, %v179_v40 }
  0x29   :  { %v184_v52 = vmul.f32 2.0, %v181_v48  ;;  %v183_v55 = vadd.f32 0.0001, %v182_v51 }
  0x2a   :  { %v190_v47 = vadd.f32 0.0009, %v189_v46 }
  0x2b   :  { %v185_v56 = vadd.f32 0.0009, %v184_v52 }
  0x2c   :  { %v191_v49 = vmul.f32 %v190_v47, %v188_v45 }
  0x2d   :  { %v186_v59 = vmul.f32 %v185_v56, %v183_v55 }
  0x2e   :  { %270 = vrcp.f32 %v191_v49 }
  0x34   :  { %v271_v57 = vpop.eup %270 }
  0x35   :  { %v193_v58 = vmul.f32 %v271_v57, %v191_v49 }
  0x37   :  { %v194_v60 = vsub.f32 2.0, %v193_v58 }
  0x39   :  { %v195_v61 = vmul.f32 %v271_v57, %v194_v60 }
  0x3b   :  { %v196_v62 = vmul.f32 %v195_v61, %v186_v59 }
  0x3d   :  { %v224_v63 = vsel %vm223_vm4, %v196_v62, 0.0 }
  0x3e   :  { %233 = vadd.xlane.f32.xlu0 %v224_v63 }
  0xb1   :  { %v234_v0 = vpop.xlane.xlu0 %233 }
  0xb2   :  { %v235_v1 = vrot.slane %v234_v0, 4 }
  0xb4   :  { %v236_v2 = vadd.f32 %v235_v1, %v234_v0 }
  0xb6   :  { %v237_v3 = vrot.slane %v236_v2, 2 }
  0xb8   :  { %v238_v4 = vadd.f32 %v237_v3, %v236_v2 }
  0xba   :  { %v239_v5 = vrot.slane %v238_v4, 1 }
  0xbc   :  { %v240_v6 = vadd.f32 %v239_v5, %v238_v4 }
  0xbe   :  { %263 = vpush %v240_v6 }
  0xef   :  { %s264_s24 = spop %263 }
  0xf0   :  { %s242_s25 = smul.f32 0.0034722222, %s264_s24 }
  0xf2   :  { %v243_v7 = vstv %s242_s25 }
  0xf3   :  { %244 = vst [vmem:[#allocation8] sm:$0xff] %v243_v7 }
  0xf4   :  { %255 = dma.vmem_to_hbm [thread:$0]  %s251_s1, 128, %s253_s23, [#allocation5]  }
  0xf5   :  { %348 = dma.done.wait [#allocation5], 128  }
  0xf6   :  { %349 = vsyncadd [#allocation5], 4294967168 }
  0xf7   :  { %260 = vsyncpa [#allocation4], 1 }
  0xf8   :  { %261 = vsyncpa [#allocation7], 1 }
  0xf9   :  { %262 = vsyncpa [#allocation5], 1 }

</bundles_post_ra>
